<compile_context>
chip_gen: v7x
topology: tpu7x:2x2x1
jax: 0.10.0
libtpu: 0.0.40
codegen_flags: <defaults>
</compile_context>

<pallas_src>
import jax
import jax.numpy as jnp
from jax.experimental import pallas as pl
from jax.experimental.pallas import tpu as pltpu


def _round_up(x: int, m: int) -> int:
    return ((x + m - 1) // m) * m


def _cdiv(a: int, b: int) -> int:
    return (a + b - 1) // b


def _sublane_quantum(dtype) -> int:
    # f32 -> 8 sublanes per vreg, bf16 -> 16, int8/fp8 -> 32.
    return max(8, 32 // jnp.dtype(dtype).itemsize)


def _pick_tile(dim: int, preferred: int, align: int):
    """Return (tile, padded_dim).

    * dim <= preferred: use the whole dim as a single block ("block == full
      array dim" lifts the (8,128) divisibility requirement) -> no padding.
    * otherwise prefer the largest aligned divisor tile (no padding), falling
      back to a balanced tile with minimal padding.
    """
    if dim <= preferred:
        return dim, dim

    best_div = 0
    t = (preferred // align) * align
    while t >= align:
        if dim % t == 0:
            best_div = t
            break
        t -= align

    nblocks = _cdiv(dim, preferred)
    balanced = _round_up(_cdiv(dim, nblocks), align)
    padded = balanced * _cdiv(dim, balanced)

    if best_div >= min(preferred // 2, balanced):
        return best_div, dim
    if best_div >= align and padded > dim:
        # A smaller divisor tile still beats materializing padded operands
        # (each jnp.pad is a full extra HBM read+write).
        return best_div, dim
    return balanced, padded


def _matmul_kernel_f32_out(x_ref, y_ref, o_ref):
    # Output block is f32 and its index_map ignores k, so it stays resident in
    # VMEM across the whole K loop -> use it directly as the accumulator.
    @pl.when(pl.program_id(3) == 0)
    def _():
        o_ref[...] = jnp.zeros_like(o_ref)

    o_ref[...] += jnp.dot(
        x_ref[...], y_ref[...], preferred_element_type=jnp.float32
    )


def _matmul_kernel_scratch(x_ref, y_ref, o_ref, acc_ref):
    # Narrow output dtype: accumulate in a f32 VMEM scratch, cast once at the end.
    k = pl.program_id(3)

    @pl.when(k == 0)
    def _():
        acc_ref[...] = jnp.zeros_like(acc_ref)

    acc_ref[...] += jnp.dot(
        x_ref[...], y_ref[...], preferred_element_type=jnp.float32
    )

    @pl.when(k == pl.num_programs(3) - 1)
    def _():
        o_ref[...] = acc_ref[...].astype(o_ref.dtype)


def pallas_matmul(
    x,
    y,
    *,
    tm_pref=None,
    tn_pref=None,
    tk_pref=None,
    cast_to_bf16=False,
    vmem_cap_bytes=48 * 1024 * 1024,  # safe on v7x (64 MiB/TC), fine on v5e/v6e
):
    """Equivalent of torch.matmul for 2D or matched-batch 3D floating inputs."""
    # TODO(synk): full torch.matmul broadcasting / 1-D operand semantics are not
    # implemented; this wrapper supports 2D @ 2D and matched-batch 3D @ 3D.
    squeeze_batch = False
    if x.ndim == 2 and y.ndim == 2:
        x, y = x[None], y[None]
        squeeze_batch = True
    assert x.ndim == 3 and y.ndim == 3, "wrapper supports 2D or batched 3D inputs"
    B, M, K = x.shape
    B2, K2, N = y.shape
    assert B == B2 and K == K2, f"shape mismatch: {x.shape} @ {y.shape}"
    assert jnp.issubdtype(x.dtype, jnp.floating) and jnp.issubdtype(
        y.dtype, jnp.floating
    ), "only floating dtypes are routed to the MXU path"

    # TPU MXU has no f64 path.
    if x.dtype == jnp.float64:
        x = x.astype(jnp.float32)
    if y.dtype == jnp.float64:
        y = y.astype(jnp.float32)
    if cast_to_bf16:
        x = x.astype(jnp.bfloat16)
        y = y.astype(jnp.bfloat16)

    out_dtype = jnp.result_type(x.dtype, y.dtype)
    x_isz = jnp.dtype(x.dtype).itemsize
    y_isz = jnp.dtype(y.dtype).itemsize
    o_isz = jnp.dtype(out_dtype).itemsize

    # Generation-agnostic defaults: big enough output tiles to be compute-bound
    # on v5e/v6e/v7x, small enough to sit comfortably under v7x's 64 MiB VMEM.
    narrow_inputs = max(x_isz, y_isz) <= 2
    if tm_pref is None:
        tm_pref = 1024 if narrow_inputs else 512
    if tn_pref is None:
        tn_pref = 1024 if narrow_inputs else 512
    if tk_pref is None:
        tk_pref = 512

    tm_align = max(_sublane_quantum(x.dtype), _sublane_quantum(out_dtype))
    tm, Mp = _pick_tile(M, tm_pref, tm_align)
    tn, Np = _pick_tile(N, tn_pref, 128)
    tk, Kp = _pick_tile(K, tk_pref, 128)

    # Give the second TensorCore (v7x megacore) work when the problem only
    # produces a single output tile but is big enough to be worth splitting.
    if B * (Mp // tm) * (Np // tn) == 1:
        if tm >= 256 and (tm // 2) % tm_align == 0:
            tm //= 2
        elif tn >= 256 and (tn // 2) % 128 == 0:
            tn //= 2

    # Zero-pad only when a dim could not be tiled without it.
    if (Mp, Kp) != (M, K):
        x = jnp.pad(x, ((0, 0), (0, Mp - M), (0, Kp - K)))
    if (Kp, Np) != (K, N):
        y = jnp.pad(y, ((0, 0), (0, Kp - K), (0, Np - N)))

    grid = (B, Mp // tm, Np // tn, Kp // tk)

    direct_acc = out_dtype == jnp.float32
    kernel = _matmul_kernel_f32_out if direct_acc else _matmul_kernel_scratch
    scratch_shapes = [] if direct_acc else [pltpu.VMEM((tm, tn), jnp.float32)]

    # VMEM budget: double-buffered input/output tiles (+ scratch), with headroom.
    needed = (
        2 * (tm * tk * x_isz + tk * tn * y_isz)
        + 2 * tm * tn * o_isz
        + (0 if direct_acc else tm * tn * 4)
    )
    vmem_limit = int(min(vmem_cap_bytes, max(32 * 1024 * 1024, 2 * needed)))

    cost = pl.CostEstimate(
        flops=2 * B * M * N * K,
        transcendentals=0,
        bytes_accessed=B * (M * K * x_isz + K * N * y_isz + M * N * o_isz),
    )

    out = pl.pallas_call(
        kernel,
        out_shape=jax.ShapeDtypeStruct((B, Mp, Np), out_dtype),
        grid_spec=pltpu.PrefetchScalarGridSpec(
            num_scalar_prefetch=0,
            grid=grid,
            in_specs=[
                pl.BlockSpec((pl.Squeezed(), tm, tk), lambda b, i, j, k: (b, i, k)),
                pl.BlockSpec((pl.Squeezed(), tk, tn), lambda b, i, j, k: (b, k, j)),
            ],
            out_specs=pl.BlockSpec(
                (pl.Squeezed(), tm, tn), lambda b, i, j, k: (b, i, j)
            ),
            scratch_shapes=scratch_shapes,
        ),
        compiler_params=pltpu.CompilerParams(
            dimension_semantics=("parallel", "parallel", "parallel", "arbitrary"),
            vmem_limit_bytes=vmem_limit,
        ),
        cost_estimate=cost,
    )(x, y)

    if (Mp, Np) != (M, N):
        out = out[:, :M, :N]
    if squeeze_batch:
        out = out[0]
    return out


if __name__ == "__main__":
    key = jax.random.PRNGKey(0)
    k1, k2, k3, k4, k5, k6 = jax.random.split(key, 6)

    # 1) Small batched shapes implied by the module: x [2, 8, 32], y [2, 32, 16].
    #    Full-dim tiles -> no padding, no masked-store surprises.
    x = jax.random.normal(k1, (2, 8, 32), dtype=jnp.float32)
    y = jax.random.normal(k2, (2, 32, 16), dtype=jnp.float32)
    out = pallas_matmul(x, y)
    jax.block_until_ready(out)
    ref = jnp.matmul(x, y)
    assert out.shape == ref.shape == (2, 8, 16)
    assert jnp.allclose(out, ref, atol=1e-4, rtol=1e-4)

    # 2) Plain 2D matmul path (torch.matmul on 2D inputs).
    out2d = pallas_matmul(x[0], y[0])
    jax.block_until_ready(out2d)
    assert out2d.shape == (8, 16)
    assert jnp.allclose(out2d, ref[0], atol=1e-4, rtol=1e-4)

    # 3) Multi-K-step f32 path: K=640 -> divisor tile tk=128 (no padding),
    #    direct accumulation into the resident f32 output block.
    xb = jax.random.normal(k3, (2, 384, 640), dtype=jnp.float32)
    yb = jax.random.normal(k4, (2, 640, 512), dtype=jnp.float32)
    outb = pallas_matmul(xb, yb)
    jax.block_until_ready(outb)
    refb = jnp.matmul(xb, yb)
    assert outb.shape == refb.shape == (2, 384, 512)
    rel_err = float(jnp.max(jnp.abs(outb - refb)) / jnp.max(jnp.abs(refb)))
    assert rel_err < 2e-2, f"relative error too large: {rel_err}"

    # 4) bf16 path: f32 scratch-accumulator kernel + single-tile megacore split.
    xc = jax.random.normal(k5, (1, 256, 384), dtype=jnp.bfloat16)
    yc = jax.random.normal(k6, (1, 384, 256), dtype=jnp.bfloat16)
    outc = pallas_matmul(xc, yc)
    jax.block_until_ready(outc)
    refc = jnp.matmul(xc, yc)
    assert outc.shape == refc.shape == (1, 256, 256)
    diff = jnp.abs(outc.astype(jnp.float32) - refc.astype(jnp.float32))
    rel_c = float(jnp.max(diff) / jnp.max(jnp.abs(refc.astype(jnp.float32))))
    assert rel_c < 5e-2, f"bf16 relative error too large: {rel_c}"

    print("KERNEL_OK")
</pallas_src>

<mosaic_0001>
module attributes {stable_mosaic.version = 11 : i64} {
  func.func @_matmul_kernel_f32_out(%arg0: i32, %arg1: i32, %arg2: i32, %arg3: i32, %arg4: memref<1x8x32xf32, #tpu.memory_space<vmem>>, %arg5: memref<1x32x16xf32, #tpu.memory_space<vmem>>, %arg6: memref<1x8x16xf32, #tpu.memory_space<vmem>>) attributes {dimension_semantics = [#tpu.dimension_semantics<parallel>, #tpu.dimension_semantics<parallel>, #tpu.dimension_semantics<parallel>, #tpu.dimension_semantics<arbitrary>], iteration_bounds = array<i64: 2, 1, 1, 1>, scalar_prefetch = 0 : i64, scratch_operands = 0 : i64, tpu.core_type = #tpu.core_type<tc>, window_params = [{transform_indices = @transform_0, window_bounds = array<i64: 1, 8, 32>}, {transform_indices = @transform_1, window_bounds = array<i64: 1, 32, 16>}, {transform_indices = @transform_2, window_bounds = array<i64: 1, 8, 16>}]} {
    %c0_i32 = arith.constant 0 : i32
    %0 = arith.cmpi eq, %arg3, %c0_i32 : i32
    %1 = arith.extui %0 : i1 to i32
    %c0_i32_0 = arith.constant 0 : i32
    %2 = arith.cmpi ne, %1, %c0_i32_0 : i32
    scf.if %2 {
      %cst_12 = arith.constant 0.000000e+00 : f32
      %14 = vector.broadcast %cst_12 : f32 to vector<8x16xf32>
      %c0_13 = arith.constant 0 : index
      %c0_14 = arith.constant 0 : index
      %c0_15 = arith.constant 0 : index
      %15 = vector.load %arg6[%c0_13, %c0_14, %c0_15] : memref<1x8x16xf32, #tpu.memory_space<vmem>>, vector<1x8x16xf32>
      %16 = vector.shape_cast %15 : vector<1x8x16xf32> to vector<8x16xf32>
      %17 = vector.shape_cast %14 : vector<8x16xf32> to vector<1x8x16xf32>
      tpu.vector_store %arg6[%c0_13, %c0_14, %c0_15], %17 {strides = array<i32>} : memref<1x8x16xf32, #tpu.memory_space<vmem>>, vector<1x8x16xf32>,
    } else {
    }
    %c0 = arith.constant 0 : index
    %c0_1 = arith.constant 0 : index
    %c0_2 = arith.constant 0 : index
    %3 = vector.load %arg6[%c0, %c0_1, %c0_2] : memref<1x8x16xf32, #tpu.memory_space<vmem>>, vector<1x8x16xf32>
    %4 = vector.shape_cast %3 : vector<1x8x16xf32> to vector<8x16xf32>
    %c0_3 = arith.constant 0 : index
    %c0_4 = arith.constant 0 : index
    %c0_5 = arith.constant 0 : index
    %5 = vector.load %arg4[%c0_3, %c0_4, %c0_5] : memref<1x8x32xf32, #tpu.memory_space<vmem>>, vector<1x8x32xf32>
    %6 = vector.shape_cast %5 : vector<1x8x32xf32> to vector<8x32xf32>
    %c0_6 = arith.constant 0 : index
    %c0_7 = arith.constant 0 : index
    %c0_8 = arith.constant 0 : index
    %7 = vector.load %arg5[%c0_6, %c0_7, %c0_8] : memref<1x32x16xf32, #tpu.memory_space<vmem>>, vector<1x32x16xf32>
    %8 = vector.shape_cast %7 : vector<1x32x16xf32> to vector<32x16xf32>
    %cst = arith.constant dense<0.000000e+00> : vector<8x16xf32>
    %9 = tpu.matmul %6, %8, %cst {dimension_numbers = #tpu.dot_dimension_numbers<[1], [0], [0], [1], [0, 0, 1, 1], [], []>} : vector<8x32xf32>, vector<32x16xf32>, vector<8x16xf32> -> vector<8x16xf32>
    %10 = arith.addf %4, %9 : vector<8x16xf32>
    %c0_9 = arith.constant 0 : index
    %c0_10 = arith.constant 0 : index
    %c0_11 = arith.constant 0 : index
    %11 = vector.load %arg6[%c0_9, %c0_10, %c0_11] : memref<1x8x16xf32, #tpu.memory_space<vmem>>, vector<1x8x16xf32>
    %12 = vector.shape_cast %11 : vector<1x8x16xf32> to vector<8x16xf32>
    %13 = vector.shape_cast %10 : vector<8x16xf32> to vector<1x8x16xf32>
    tpu.vector_store %arg6[%c0_9, %c0_10, %c0_11], %13 {strides = array<i32>} : memref<1x8x16xf32, #tpu.memory_space<vmem>>, vector<1x8x16xf32>,
    return
  }
  func.func @transform_0(%arg0: i32, %arg1: i32, %arg2: i32, %arg3: i32) -> (i32, i32, i32) {
    %c0_i32 = arith.constant 0 : i32
    return %arg0, %arg1, %arg3 : i32, i32, i32
  }
  func.func @transform_1(%arg0: i32, %arg1: i32, %arg2: i32, %arg3: i32) -> (i32, i32, i32) {
    %c0_i32 = arith.constant 0 : i32
    return %arg0, %arg3, %arg2 : i32, i32, i32
  }
  func.func @transform_2(%arg0: i32, %arg1: i32, %arg2: i32, %arg3: i32) -> (i32, i32, i32) {
    %c0_i32 = arith.constant 0 : i32
    return %arg0, %arg1, %arg2 : i32, i32, i32
  }
}

</mosaic_0001>

<bundles_post_ra>
// kernel: tpu_custom_call.1
= control target key start
LH: loop header
LB: loop body
LE: loop exit
PB: predicated region body
PF: predicated region fallthrough
CT: control target
= control target key end

     0   :  { %7 = vsyncpa [#allocation3], 0  ;;  %s760_s0 = inlined_call_operand.vmem [shape: f32[2,8,32], index: 0, kind: input, shape index: {}]   ;;  %s761_s1 = inlined_call_operand.vmem [shape: f32[2,32,16], index: 1, kind: input, shape index: {}]   ;;  %s762_s2 = inlined_call_operand.hbm [shape: f32[2,8,16], index: 2, kind: output, shape index: {}]  }
   0x1   :  { %9 = vsyncpa [#allocation3 + $0x1], 0  ;;  %s639_s9 = smov 0   ;;  %s641_s10 = smov 0  }
   0x2   :  { %s643_s11 = smov 0   ;;  %s645_s12 = smov 0  }
   0x3   :  { %s647_s13 = smov 0   ;;  %s649_s14 = smov 0  }
   0x4 LB: > { %s445_s15 = sadd.s32 4294967295, %s618_s14   ;;  %s446_s16 = sadd.s32 4294967294, %s618_s14   ;;  %s618_s14 = sphi %s649_s14, %s15_s14   ;;  %s614_s13 = sphi %s647_s13, %s769_s13   ;;  %s610_s12 = sphi %s645_s12, %s768_s12   ;;  %s606_s11 = sphi %s643_s11, %s767_s11   ;;  %s602_s10 = sphi %s641_s10, %s766_s10   ;;  %s598_s9 = sphi %s639_s9, %s765_s9  }
   0x5   : > { %s41_s17 = sadd.s32 1, %s614_s13  ;;  %s112_s18 = sadd.s32 1, %s606_s11 }
   0x6   : > { %p43_p0 = scmp.ge.s32.totalorder %s41_s17, 2  ;;  %p122_p1 = scmp.ne.s32.totalorder %s606_s11, %s602_s10 }
   0x7   : > { %p123_p2 = scmp.eq.s32.totalorder %s445_s15, 1  ;;  %p128_p3 = scmp.ne.s32.totalorder %s602_s10, %s598_s9 }
   0x8   : > { %s771_s17 = smov (%p43_p0, %s41_s17), 0  ;;  %p129_p5 = scmp.eq.s32.totalorder %s446_s16, 1 }
   0x9   : > { %p679_p4 = por %p123_p2, %p122_p1  ;;  %s105_s20 = ssub.s32 %s614_s13, %s771_s17 }
   0xa   : > { %p449_p6 = scmp.ge.s32.totalorder %s618_s14, 1  ;;  %p110_p7 = scmp.eq.s32.totalorder %s105_s20, 0 }
   0xb   : > { %p686_p8 = por %p129_p5, %p128_p3  ;;  %p176_p9 = scmp.lt.s32.totalorder %s618_s14, 3 }
   0xc   : > { %s692_s22 = scalar_select %p110_p7, %s606_s11, %s112_s18  }
   0xd   : > { %p177_p10 = pnand %p449_p6, %p176_p9 }
   0xe   : > { %p215_p11 = scmp.lt.s32.totalorder (!%p177_p10), %s610_s12, 1  ;;  %s212_s23 = sand.u32 (!%p177_p10), 1, %s602_s10   ;;  %v620_v0 = vmov (!%p177_p10), 0.0|0.0   ;;  %vm242_vm0 = vcmask (!%p177_p10), 130048   ;;  %vm621_vm1 = vmmov (!%p177_p10), 0   ;;  %v622_v1 = vmov (!%p177_p10), 0.0  }
   0xf   : > { %180 = sbr.rel (%p177_p10) target bundleno = 264 (0x108), region = 28  ;;  %476 = vmatprep.subr.bf16.mxu0 (!%p177_p10), %v620_v0  ;;  %s450_s24 = sshll.u32 (!%p177_p10), %s212_s23, 3  ;;  %473 = vmatprep.mubr.msk.f32.mxu0 (!%p177_p10), %vm621_vm1, %v622_v1  ;;  %vm250_vm2 = vcmask (!%p177_p10), 261120  }
  0x10   : > { %s214_s27 = scalar_lea.vmem (!%p177_p10), [#allocation2], %s450_s24  ;;  %s456_s7 = sshll.u32 (!%p177_p10), %s610_s12, 7 }
  0x11   : > { %243 = vst.msk [vmem:[%s214_s27] sm:$0xff] (!%p177_p10), %vm242_vm0, %v622_v1  ;;  %s343_s8 = sshll.u32 (!%p177_p10), %s214_s27, 4  ;;  %s710_s18 = scalar_lea.hbm (!%p177_p10), %s762_s2, %s456_s7  ;;  %s712_s8 = int_to_ptr.vmem [resolvable:$true] %s343_s8 }
  0x12   : > { %s328_s20 = scalar_lea.sflag (!%p177_p10), [#allocation3], %s212_s23  ;;  %s540_s24 = scalar_lea.vmem (!%p177_p10), %s712_s8, 128 }
  0x13   : > { %p541_p12 = scmp.ne.s32.totalorder (!%p177_p10), %s712_s8, %s540_s24 }
  0x15   : > { %p542_p13 = pnand (!%p177_p10), %p541_p12, %p679_p4 }
  0x16   : > { %s216_s25 = scalar_select %p215_p11, %s610_s12, 1 }
  0x17   : > { %p543_p0 = pneg %p542_p13  ;;  %s623_s12 = smov [#allocation2]  }
  0x18   : > { %s459_s26 = sshll.u32 %s216_s25, 5  ;;  %s451_s3 = sshll.u32 %s216_s25, 3  ;;  %v244_v9 = vld [vmem:[%s214_s27] sm:$0xff] }
  0x19   : > { %s236_s30 = scalar_lea.vmem %s761_s1, %s459_s26  ;;  %s224_s6 = scalar_lea.vmem %s760_s0, %s451_s3 }
  0x1a   : > { %v246_v2 = vld [vmem:[%s236_s30] sm:$0xff]  ;;  %v247_v3 = vld [vmem:[%s236_s30 + $0x8] sm:$0xff]  ;;  %v248_v4 = vld [vmem:[%s236_s30 + $0x10] sm:$0xff]  ;;  %s544_s25 = sshll.u32 %s623_s12, 4  ;;  %s545_s25 = int_to_ptr.vmem [resolvable:$false] %s544_s25 }
  0x1b   : > { %v477_v5 = vpack.c.bf16 %v247_v3, %v246_v2  ;;  %v249_v6 = vld [vmem:[%s236_s30 + $0x18] sm:$0xff]  ;;  %v245_v8 = vld [vmem:[%s224_s6] sm:$0xff]  ;;  %s546_s26 = scalar_lea.vmem %s545_s25, 256  ;;  %p547_p1 = scmp.lt.s32.totalorder %s712_s8, %s545_s25 }
  0x1c   : > { %v480_v7 = vpack.c.bf16 %v249_v6, %v248_v4  ;;  %p548_p2 = scmp.lt.s32.totalorder %s546_s26, %s540_s24 }
  0x1d   : > { %478 = vmatpush3.bf16.msra.mxu0 %v477_v5 }
  0x1e   : > { %479 = vmatprep.subr.bf16.mxu0 %v620_v0  ;;  %p549_p3 = por %p548_p2, %p547_p1 }
  0x20   : > { %p550_p5 = pnand %p549_p3, %p543_p0 }
  0x21   : > { %481 = vmatpush3.bf16.msra.mxu0 %v480_v7 }
  0x24   : > { %474 = vmatmul.mubr.msk.f32.vlgmr.msra.gmra.mrb[0].mxu0 %vm250_vm2, %v245_v8 }
  0xf7   : > { %v320_v10 = vpop.f32.mrb[0].mxu0 }
  0xf8   : > { %v324_v11 = vadd.f32 %v320_v10, %v244_v9  ;;  %v475_v12 = vpop.f32.mrb[1].mxu0 }
  0xfa   : > { %326 = vst.msk [vmem:[%s214_s27] sm:$0xff] %vm242_vm0, %v324_v11 }
  0xfb   : > { %553 = shalt.err (!%p550_p5)
}
  0xfc   : > { %s554_s23 = scalar_lea.hbm %s710_s18, 128  ;;  %s558_s29 = scalar_lea.hbm %s762_s2, 256 }
  0xfd   : > { %p555_p6 = scmp.ne.s32.totalorder %s710_s18, %s554_s23  ;;  %p559_p10 = scmp.lt.u32.totalorder %s710_s18, %s762_s2 }
  0xfe   : > { %p560_p11 = scmp.lt.u32.totalorder %s558_s29, %s554_s23  ;;  %p562_p13 = scmp.lt.u32.totalorder %s554_s23, %s710_s18 }
  0xff   : > { %p556_p7 = pnand %p555_p6, %p679_p4 }
 0x100   : > { %p561_p12 = por %p560_p11, %p559_p10 }
 0x101   : > { %p557_p9 = pneg %p556_p7 }
 0x102   : > { %p563_p0 = por %p562_p13, %p561_p12 }
 0x104   : > { %p564_p1 = pnand %p563_p0, %p557_p9 }
 0x106   : > { %567 = shalt.err (!%p564_p1)
}
 0x107   : > { %482 = dma.vmem_to_hbm [thread:$0]  (%p679_p4), %s712_s8, 128, %s710_s18, %s328_s20  }
 0x108 PF: > { %p488_p2 = scmp.ge.s32.totalorder %s618_s14, 2  ;;  %s355_s4 = sand.u32 1, %s598_s9  }
 0x109   : > { %s356_s5 = scalar_lea.sflag [#allocation3], %s355_s4 }
 0x10a   : > { %p485_p3 = pnand %p488_p2, %p686_p8 }
 0x10c   : > { %593 = dma.done.wait (!%p485_p3), %s356_s5, 128  }
 0x10d   : > { %595 = vsyncadd (!%p485_p3), %s356_s5, 4294967168  ;;  %s15_s14 = sadd.s32 1, %s618_s14   ;;  %s765_s9 = smov %s602_s10 }
 0x10e   : > { %p12_p5 = scmp.ge.s32.totalorder %s15_s14, 4   ;;  %s766_s10 = smov %s606_s11 }
 0x10f   : > { %s767_s11 = smov %s692_s22  ;;  %s768_s12 = smov %s614_s13 }
 0x110   : > { %s769_s13 = smov %s771_s17  ;;  %14 = sbr.rel (!%p12_p5) target bundleno = 4 (0x4), region = 70 }
 0x117   :  { %361 = vsyncpa [#allocation3], 1 }
 0x118   :  { %363 = vsyncpa [#allocation3 + $0x1], 1 }

</bundles_post_ra>
